<compile_context>
chip_gen: v7x
topology: tpu7x:2x2x1
jax: 0.10.0
libtpu: 0.0.40
codegen_flags: <defaults>
</compile_context>

<pallas_src>
import functools

import jax
import jax.numpy as jnp
from jax.experimental import pallas as pl
from jax.experimental.pallas import tpu as pltpu


def _round_up(n, m):
    return ((n + m - 1) // m) * m


def _pad2(a, rows, cols):
    return jnp.pad(a, ((0, rows - a.shape[0]), (0, cols - a.shape[1])))


def _mlp_kernel(x_ref,
                w1_ref, b1_ref,
                w2_ref, b2_ref,
                w3_ref, b3_ref,
                w4_ref, b4_ref,
                o_ref, sumsq_ref,
                *, tile_b, batch_valid, need_mask):
    i = pl.program_id(0)

    @pl.when(i == 0)
    def _init():
        sumsq_ref[...] = jnp.zeros_like(sumsq_ref)

    cdt = w1_ref.dtype  # matmul-input dtype (f32 or bf16); accumulation is f32
    x = x_ref[...]

    # layer1: Linear + ReLU (bias / ReLU kept in f32)
    h = jnp.dot(x, w1_ref[...], preferred_element_type=jnp.float32) + b1_ref[...]
    h = jnp.maximum(h, 0.0)

    # layer2: Linear + ReLU
    h = jnp.dot(h.astype(cdt), w2_ref[...],
                preferred_element_type=jnp.float32) + b2_ref[...]
    h = jnp.maximum(h, 0.0)

    # head[0..1]: Linear + ReLU
    h = jnp.dot(h.astype(cdt), w3_ref[...],
                preferred_element_type=jnp.float32) + b3_ref[...]
    h = jnp.maximum(h, 0.0)

    # head[2]: Linear (no activation)
    h = jnp.dot(h.astype(cdt), w4_ref[...],
                preferred_element_type=jnp.float32) + b4_ref[...]

    # Mask padded batch rows so they contribute neither to the output nor to
    # the dim=0 sum-of-squares.  Statically elided when batch % tile == 0.
    if need_mask:
        row = jax.lax.broadcasted_iota(jnp.int32, h.shape, 0) + i * tile_b
        h = jnp.where(row < batch_valid, h, 0.0)

    # Write the pre-norm tile into the VMEM-resident output block and
    # accumulate per-column sum-of-squares.
    start = pl.multiple_of(i * tile_b, tile_b)
    o_ref[pl.ds(start, tile_b), :] = h.astype(o_ref.dtype)
    sumsq_ref[...] += jnp.sum(h * h, axis=0, keepdims=True)

    # Last tile: rescale the whole resident output (rsqrt on the EUP, then a
    # single broadcast multiply) == y / max(||y||_2, 1e-12) along dim=0.
    @pl.when(i == pl.num_programs(0) - 1)
    def _finalize():
        inv = jax.lax.rsqrt(jnp.maximum(sumsq_ref[...], 1e-24))
        o_ref[...] = (o_ref[...] * inv).astype(o_ref.dtype)


def clcp_mlp_forward(x, params, *, tile_b=256, compute_dtype=jnp.float32):
    """x: [B, in_dim] f32.  params: dict of (w, b), w pre-transposed [in, out],
    b as [1, out].  Returns [B, feat_dim] f32, L2-normalized along dim=0."""
    (w1, b1), (w2, b2), (w3, b3), (w4, b4) = (
        params["layer1"], params["layer2"], params["head0"], params["head2"])

    B, in_dim = x.shape
    h1_dim = w1.shape[1]
    out_dim = w2.shape[1]
    feat_dim = w4.shape[1]

    # Lane-dense padding: every feature axis -> multiple of 128.
    in_p = _round_up(in_dim, 128)
    h1_p = _round_up(h1_dim, 128)
    od_p = _round_up(out_dim, 128)
    ft_p = _round_up(feat_dim, 128)

    # Batch tiling: tile is a multiple of 8 sublanes; batch padded to the tile.
    tb = min(int(tile_b), _round_up(B, 8))
    tb = _round_up(tb, 8)
    b_p = _round_up(B, tb)
    num_tiles = b_p // tb
    need_mask = (b_p != B)

    xp = _pad2(x, b_p, in_p).astype(compute_dtype)
    # Weights in compute dtype (bf16 keeps the MXU on its native path on
    # v6e/v7x); biases stay f32 for the f32 epilogue (v5e-friendly as well).
    w1p = _pad2(w1, in_p, h1_p).astype(compute_dtype)
    w2p = _pad2(w2, h1_p, od_p).astype(compute_dtype)
    w3p = _pad2(w3, od_p, od_p).astype(compute_dtype)
    w4p = _pad2(w4, od_p, ft_p).astype(compute_dtype)
    b1p = _pad2(b1, 1, h1_p).astype(jnp.float32)
    b2p = _pad2(b2, 1, od_p).astype(jnp.float32)
    b3p = _pad2(b3, 1, od_p).astype(jnp.float32)
    b4p = _pad2(b4, 1, ft_p).astype(jnp.float32)

    cbytes = jnp.dtype(compute_dtype).itemsize
    vmem_est = (
        2 * tb * in_p * cbytes                                   # x double-buffer
        + b_p * ft_p * 4                                         # resident output
        + 2 * (in_p * h1_p + h1_p * od_p + od_p * od_p + od_p * ft_p) * cbytes
        + 2 * (h1_p + 2 * od_p + ft_p) * 4                       # biases
        + ft_p * 4                                               # sumsq scratch
        + 4 * tb * max(h1_p, od_p, ft_p) * 4                     # live activations
    )
    # Cap at 64 MiB so the same plan is valid on v7x (64 MiB VMEM per TC).
    vmem_limit = int(min(max(2 * vmem_est, 16 * 2**20), 64 * 2**20))

    kernel = functools.partial(
        _mlp_kernel, tile_b=tb, batch_valid=B, need_mask=need_mask)
    resident = lambda i: (0, 0)

    out_padded = pl.pallas_call(
        kernel,
        out_shape=jax.ShapeDtypeStruct((b_p, ft_p), jnp.float32),
        grid_spec=pltpu.PrefetchScalarGridSpec(
            num_scalar_prefetch=0,
            grid=(num_tiles,),
            in_specs=[
                pl.BlockSpec((tb, in_p), lambda i: (i, 0)),      # streamed x tiles
                pl.BlockSpec((in_p, h1_p), resident),
                pl.BlockSpec((1, h1_p), resident),
                pl.BlockSpec((h1_p, od_p), resident),
                pl.BlockSpec((1, od_p), resident),
                pl.BlockSpec((od_p, od_p), resident),
                pl.BlockSpec((1, od_p), resident),
                pl.BlockSpec((od_p, ft_p), resident),
                pl.BlockSpec((1, ft_p), resident),
            ],
            # Same block index every step -> output stays resident in VMEM
            # across all batch tiles (needed for the dim=0 normalization).
            out_specs=pl.BlockSpec((b_p, ft_p), resident),
            scratch_shapes=[pltpu.VMEM((1, ft_p), jnp.float32)],
        ),
        compiler_params=pltpu.CompilerParams(
            dimension_semantics=("arbitrary",),
            vmem_limit_bytes=vmem_limit,
        ),
    )(xp, w1p, b1p, w2p, b2p, w3p, b3p, w4p, b4p)

    return out_padded[:B, :feat_dim]


def init_params(key, in_dim, hidden1, out_dim, feat_dim):
    """Deterministic synthetic init (uniform, like nn.Linear's default range)."""
    def linear(k, fan_in, fan_out):
        kw, kb = jax.random.split(k)
        bound = 1.0 / jnp.sqrt(fan_in)
        w = jax.random.uniform(kw, (fan_in, fan_out), jnp.float32, -bound, bound)
        b = jax.random.uniform(kb, (1, fan_out), jnp.float32, -bound, bound)
        return w, b

    k1, k2, k3, k4 = jax.random.split(key, 4)
    return {
        "layer1": linear(k1, in_dim, hidden1),
        "layer2": linear(k2, hidden1, out_dim),
        "head0": linear(k3, out_dim, out_dim),
        "head2": linear(k4, out_dim, feat_dim),
    }


def reference_forward(x, params):
    """Pure-JAX reference for a sanity check."""
    (w1, b1), (w2, b2), (w3, b3), (w4, b4) = (
        params["layer1"], params["layer2"], params["head0"], params["head2"])
    h = jnp.maximum(x @ w1 + b1, 0.0)
    h = jnp.maximum(h @ w2 + b2, 0.0)
    h = jnp.maximum(h @ w3 + b3, 0.0)
    h = h @ w4 + b4
    denom = jnp.maximum(jnp.linalg.norm(h, axis=0, keepdims=True), 1e-12)
    return h / denom


if __name__ == "__main__":
    # Small shapes implied by the module's Linear stack.
    in_dim = 32          # opt.model_in_dim
    hidden1 = 64         # opt.model_n_hidden_1
    out_dim = 64         # opt.model_out_dim
    feat_dim = 32        # opt.feat_dim

    key = jax.random.PRNGKey(0)
    kx1, kx2, kp = jax.random.split(key, 3)
    params = init_params(kp, in_dim, hidden1, out_dim, feat_dim)

    # Case 1: tiny batch (single tile, batch divides tile -> mask elided), f32.
    x1 = jax.random.normal(kx1, (8, in_dim), dtype=jnp.float32)
    out1 = jax.block_until_ready(clcp_mlp_forward(x1, params))
    ref1 = reference_forward(x1, params)
    assert out1.shape == (8, feat_dim)
    assert jnp.allclose(out1, ref1, atol=1e-5, rtol=1e-5)

    # Case 2: multi-tile batch with a ragged tail (exercises the streamed x
    # tiles, row masking, and the cross-tile dim=0 sum-of-squares), f32.
    x2 = jax.random.normal(kx2, (200, in_dim), dtype=jnp.float32)
    out2 = jax.block_until_ready(clcp_mlp_forward(x2, params, tile_b=64))
    ref2 = reference_forward(x2, params)
    assert out2.shape == (200, feat_dim)
    assert jnp.allclose(out2, ref2, atol=1e-5, rtol=1e-5)

    # Case 3: bf16 matmul inputs (v6e/v7x MXU fast path), f32 epilogue.
    out3 = jax.block_until_ready(
        clcp_mlp_forward(x2, params, tile_b=64, compute_dtype=jnp.bfloat16))
    col_norm = jnp.linalg.norm(out3, axis=0)
    assert bool(jnp.all(jnp.isfinite(out3)))
    assert bool(jnp.all(jnp.abs(col_norm - 1.0) < 1e-2))

    print("KERNEL_OK")
</pallas_src>

<mosaic_0001>
module attributes {stable_mosaic.version = 11 : i64} {
  func.func @_mlp_kernel(%arg0: i32, %arg1: memref<8x128xf32, #tpu.memory_space<vmem>>, %arg2: memref<128x128xf32, #tpu.memory_space<vmem>>, %arg3: memref<1x128xf32, #tpu.memory_space<vmem>>, %arg4: memref<128x128xf32, #tpu.memory_space<vmem>>, %arg5: memref<1x128xf32, #tpu.memory_space<vmem>>, %arg6: memref<128x128xf32, #tpu.memory_space<vmem>>, %arg7: memref<1x128xf32, #tpu.memory_space<vmem>>, %arg8: memref<128x128xf32, #tpu.memory_space<vmem>>, %arg9: memref<1x128xf32, #tpu.memory_space<vmem>>, %arg10: memref<8x128xf32, #tpu.memory_space<vmem>>, %arg11: memref<1x128xf32, #tpu.memory_space<vmem>>) attributes {dimension_semantics = [#tpu.dimension_semantics<arbitrary>], iteration_bounds = array<i64: 1>, scalar_prefetch = 0 : i64, scratch_operands = 1 : i64, tpu.core_type = #tpu.core_type<tc>, window_params = [{transform_indices = @transform_0, window_bounds = array<i64: 8, 128>}, {pipeline_mode = #tpu.pipeline_mode<synchronous>, transform_indices = @transform_1, window_bounds = array<i64: 128, 128>}, {pipeline_mode = #tpu.pipeline_mode<synchronous>, transform_indices = @transform_2, window_bounds = array<i64: 1, 128>}, {pipeline_mode = #tpu.pipeline_mode<synchronous>, transform_indices = @transform_3, window_bounds = array<i64: 128, 128>}, {pipeline_mode = #tpu.pipeline_mode<synchronous>, transform_indices = @transform_4, window_bounds = array<i64: 1, 128>}, {pipeline_mode = #tpu.pipeline_mode<synchronous>, transform_indices = @transform_5, window_bounds = array<i64: 128, 128>}, {pipeline_mode = #tpu.pipeline_mode<synchronous>, transform_indices = @transform_6, window_bounds = array<i64: 1, 128>}, {pipeline_mode = #tpu.pipeline_mode<synchronous>, transform_indices = @transform_7, window_bounds = array<i64: 128, 128>}, {pipeline_mode = #tpu.pipeline_mode<synchronous>, transform_indices = @transform_8, window_bounds = array<i64: 1, 128>}, {pipeline_mode = #tpu.pipeline_mode<synchronous>, transform_indices = @transform_9, window_bounds = array<i64: 8, 128>}]} {
    %c0_i32 = arith.constant 0 : i32
    %0 = arith.cmpi eq, %arg0, %c0_i32 : i32
    %1 = arith.extui %0 : i1 to i32
    %c0_i32_0 = arith.constant 0 : i32
    %2 = arith.cmpi ne, %1, %c0_i32_0 : i32
    scf.if %2 {
      %cst_32 = arith.constant 0.000000e+00 : f32
      %43 = vector.broadcast %cst_32 : f32 to vector<1x128xf32>
      %c0_33 = arith.constant 0 : index
      %c0_34 = arith.constant 0 : index
      %44 = vector.load %arg11[%c0_33, %c0_34] : memref<1x128xf32, #tpu.memory_space<vmem>>, vector<1x128xf32>
      tpu.vector_store %arg11[%c0_33, %c0_34], %43 {strides = array<i32>} : memref<1x128xf32, #tpu.memory_space<vmem>>, vector<1x128xf32>,
    } else {
    }
    %c0 = arith.constant 0 : index
    %c0_1 = arith.constant 0 : index
    %3 = vector.load %arg1[%c0, %c0_1] : memref<8x128xf32, #tpu.memory_space<vmem>>, vector<8x128xf32>
    %c0_2 = arith.constant 0 : index
    %c0_3 = arith.constant 0 : index
    %4 = vector.load %arg2[%c0_2, %c0_3] : memref<128x128xf32, #tpu.memory_space<vmem>>, vector<128x128xf32>
    %cst = arith.constant dense<0.000000e+00> : vector<8x128xf32>
    %5 = tpu.matmul %3, %4, %cst {dimension_numbers = #tpu.dot_dimension_numbers<[1], [0], [0], [1], [0, 0, 1, 1], [], []>} : vector<8x128xf32>, vector<128x128xf32>, vector<8x128xf32> -> vector<8x128xf32>
    %c0_4 = arith.constant 0 : index
    %c0_5 = arith.constant 0 : index
    %6 = vector.load %arg3[%c0_4, %c0_5] : memref<1x128xf32, #tpu.memory_space<vmem>>, vector<1x128xf32>
    %7 = vector.broadcast %6 : vector<1x128xf32> to vector<8x128xf32>
    %8 = arith.addf %5, %7 : vector<8x128xf32>
    %cst_6 = arith.constant 0.000000e+00 : f32
    %9 = vector.broadcast %cst_6 : f32 to vector<8x128xf32>
    %10 = arith.maximumf %8, %9 : vector<8x128xf32>
    %c0_7 = arith.constant 0 : index
    %c0_8 = arith.constant 0 : index
    %11 = vector.load %arg4[%c0_7, %c0_8] : memref<128x128xf32, #tpu.memory_space<vmem>>, vector<128x128xf32>
    %cst_9 = arith.constant dense<0.000000e+00> : vector<8x128xf32>
    %12 = tpu.matmul %10, %11, %cst_9 {dimension_numbers = #tpu.dot_dimension_numbers<[1], [0], [0], [1], [0, 0, 1, 1], [], []>} : vector<8x128xf32>, vector<128x128xf32>, vector<8x128xf32> -> vector<8x128xf32>
    %c0_10 = arith.constant 0 : index
    %c0_11 = arith.constant 0 : index
    %13 = vector.load %arg5[%c0_10, %c0_11] : memref<1x128xf32, #tpu.memory_space<vmem>>, vector<1x128xf32>
    %14 = vector.broadcast %13 : vector<1x128xf32> to vector<8x128xf32>
    %15 = arith.addf %12, %14 : vector<8x128xf32>
    %cst_12 = arith.constant 0.000000e+00 : f32
    %16 = vector.broadcast %cst_12 : f32 to vector<8x128xf32>
    %17 = arith.maximumf %15, %16 : vector<8x128xf32>
    %c0_13 = arith.constant 0 : index
    %c0_14 = arith.constant 0 : index
    %18 = vector.load %arg6[%c0_13, %c0_14] : memref<128x128xf32, #tpu.memory_space<vmem>>, vector<128x128xf32>
    %cst_15 = arith.constant dense<0.000000e+00> : vector<8x128xf32>
    %19 = tpu.matmul %17, %18, %cst_15 {dimension_numbers = #tpu.dot_dimension_numbers<[1], [0], [0], [1], [0, 0, 1, 1], [], []>} : vector<8x128xf32>, vector<128x128xf32>, vector<8x128xf32> -> vector<8x128xf32>
    %c0_16 = arith.constant 0 : index
    %c0_17 = arith.constant 0 : index
    %20 = vector.load %arg7[%c0_16, %c0_17] : memref<1x128xf32, #tpu.memory_space<vmem>>, vector<1x128xf32>
    %21 = vector.broadcast %20 : vector<1x128xf32> to vector<8x128xf32>
    %22 = arith.addf %19, %21 : vector<8x128xf32>
    %cst_18 = arith.constant 0.000000e+00 : f32
    %23 = vector.broadcast %cst_18 : f32 to vector<8x128xf32>
    %24 = arith.maximumf %22, %23 : vector<8x128xf32>
    %c0_19 = arith.constant 0 : index
    %c0_20 = arith.constant 0 : index
    %25 = vector.load %arg8[%c0_19, %c0_20] : memref<128x128xf32, #tpu.memory_space<vmem>>, vector<128x128xf32>
    %cst_21 = arith.constant dense<0.000000e+00> : vector<8x128xf32>
    %26 = tpu.matmul %24, %25, %cst_21 {dimension_numbers = #tpu.dot_dimension_numbers<[1], [0], [0], [1], [0, 0, 1, 1], [], []>} : vector<8x128xf32>, vector<128x128xf32>, vector<8x128xf32> -> vector<8x128xf32>
    %c0_22 = arith.constant 0 : index
    %c0_23 = arith.constant 0 : index
    %27 = vector.load %arg9[%c0_22, %c0_23] : memref<1x128xf32, #tpu.memory_space<vmem>>, vector<1x128xf32>
    %28 = vector.broadcast %27 : vector<1x128xf32> to vector<8x128xf32>
    %29 = arith.addf %26, %28 : vector<8x128xf32>
    %c8_i32 = arith.constant 8 : i32
    %30 = arith.muli %arg0, %c8_i32 : i32
    %31 = tpu.assume_multiple %30, 8 : i32
    %32 = arith.index_cast %31 : i32 to index
    %c0_24 = arith.constant 0 : index
    %33 = vector.load %arg10[%32, %c0_24] : memref<8x128xf32, #tpu.memory_space<vmem>>, vector<8x128xf32>
    tpu.vector_store %arg10[%32, %c0_24], %29 {strides = array<i32>} : memref<8x128xf32, #tpu.memory_space<vmem>>, vector<8x128xf32>,
    %c0_25 = arith.constant 0 : index
    %c0_26 = arith.constant 0 : index
    %34 = vector.load %arg11[%c0_25, %c0_26] : memref<1x128xf32, #tpu.memory_space<vmem>>, vector<1x128xf32>
    %35 = arith.mulf %29, %29 : vector<8x128xf32>
    %cst_27 = arith.constant dense<0.000000e+00> : vector<128xf32>
    %36 = vector.multi_reduction <add>, %35, %cst_27 [0] : vector<8x128xf32> to vector<128xf32>
    %37 = vector.shape_cast %36 : vector<128xf32> to vector<1x128xf32>
    %38 = arith.addf %34, %37 : vector<1x128xf32>
    %c0_28 = arith.constant 0 : index
    %c0_29 = arith.constant 0 : index
    %39 = vector.load %arg11[%c0_28, %c0_29] : memref<1x128xf32, #tpu.memory_space<vmem>>, vector<1x128xf32>
    tpu.vector_store %arg11[%c0_28, %c0_29], %38 {strides = array<i32>} : memref<1x128xf32, #tpu.memory_space<vmem>>, vector<1x128xf32>,
    %c0_i32_30 = arith.constant 0 : i32
    %40 = arith.cmpi eq, %arg0, %c0_i32_30 : i32
    %41 = arith.extui %40 : i1 to i32
    %c0_i32_31 = arith.constant 0 : i32
    %42 = arith.cmpi ne, %41, %c0_i32_31 : i32
    scf.if %42 {
      %c0_32 = arith.constant 0 : index
      %c0_33 = arith.constant 0 : index
      %43 = vector.load %arg11[%c0_32, %c0_33] : memref<1x128xf32, #tpu.memory_space<vmem>>, vector<1x128xf32>
      %cst_34 = arith.constant 1.000000e-24 : f32
      %44 = vector.broadcast %cst_34 : f32 to vector<1x128xf32>
      %45 = arith.maximumf %43, %44 : vector<1x128xf32>
      %46 = math.rsqrt %45 : vector<1x128xf32>
      %c0_35 = arith.constant 0 : index
      %c0_36 = arith.constant 0 : index
      %47 = vector.load %arg10[%c0_35, %c0_36] : memref<8x128xf32, #tpu.memory_space<vmem>>, vector<8x128xf32>
      %48 = vector.broadcast %46 : vector<1x128xf32> to vector<8x128xf32>
      %49 = arith.mulf %47, %48 : vector<8x128xf32>
      %c0_37 = arith.constant 0 : index
      %c0_38 = arith.constant 0 : index
      %50 = vector.load %arg10[%c0_37, %c0_38] : memref<8x128xf32, #tpu.memory_space<vmem>>, vector<8x128xf32>
      tpu.vector_store %arg10[%c0_37, %c0_38], %49 {strides = array<i32>} : memref<8x128xf32, #tpu.memory_space<vmem>>, vector<8x128xf32>,
    } else {
    }
    return
  }
  func.func @transform_0(%arg0: i32) -> (i32, i32) {
    %c0_i32 = arith.constant 0 : i32
    %c0_i32_0 = arith.constant 0 : i32
    return %arg0, %c0_i32 : i32, i32
  }
  func.func @transform_1(%arg0: i32) -> (i32, i32) {
    %c0_i32 = arith.constant 0 : i32
    %c0_i32_0 = arith.constant 0 : i32
    %c0_i32_1 = arith.constant 0 : i32
    return %c0_i32, %c0_i32_0 : i32, i32
  }
  func.func @transform_2(%arg0: i32) -> (i32, i32) {
    %c0_i32 = arith.constant 0 : i32
    %c0_i32_0 = arith.constant 0 : i32
    %c0_i32_1 = arith.constant 0 : i32
    return %c0_i32, %c0_i32_0 : i32, i32
  }
  func.func @transform_3(%arg0: i32) -> (i32, i32) {
    %c0_i32 = arith.constant 0 : i32
    %c0_i32_0 = arith.constant 0 : i32
    %c0_i32_1 = arith.constant 0 : i32
    return %c0_i32, %c0_i32_0 : i32, i32
  }
  func.func @transform_4(%arg0: i32) -> (i32, i32) {
    %c0_i32 = arith.constant 0 : i32
    %c0_i32_0 = arith.constant 0 : i32
    %c0_i32_1 = arith.constant 0 : i32
    return %c0_i32, %c0_i32_0 : i32, i32
  }
  func.func @transform_5(%arg0: i32) -> (i32, i32) {
    %c0_i32 = arith.constant 0 : i32
    %c0_i32_0 = arith.constant 0 : i32
    %c0_i32_1 = arith.constant 0 : i32
    return %c0_i32, %c0_i32_0 : i32, i32
  }
  func.func @transform_6(%arg0: i32) -> (i32, i32) {
    %c0_i32 = arith.constant 0 : i32
    %c0_i32_0 = arith.constant 0 : i32
    %c0_i32_1 = arith.constant 0 : i32
    return %c0_i32, %c0_i32_0 : i32, i32
  }
  func.func @transform_7(%arg0: i32) -> (i32, i32) {
    %c0_i32 = arith.constant 0 : i32
    %c0_i32_0 = arith.constant 0 : i32
    %c0_i32_1 = arith.constant 0 : i32
    return %c0_i32, %c0_i32_0 : i32, i32
  }
  func.func @transform_8(%arg0: i32) -> (i32, i32) {
    %c0_i32 = arith.constant 0 : i32
    %c0_i32_0 = arith.constant 0 : i32
    %c0_i32_1 = arith.constant 0 : i32
    return %c0_i32, %c0_i32_0 : i32, i32
  }
  func.func @transform_9(%arg0: i32) -> (i32, i32) {
    %c0_i32 = arith.constant 0 : i32
    %c0_i32_0 = arith.constant 0 : i32
    %c0_i32_1 = arith.constant 0 : i32
    return %c0_i32, %c0_i32_0 : i32, i32
  }
}

</mosaic_0001>

<bundles_post_ra>
// kernel: tpu_custom_call.1
= control target key start
LH: loop header
LB: loop body
LE: loop exit
PB: predicated region body
PF: predicated region fallthrough
CT: control target
= control target key end

     0   :  { %14 = vsyncpa [#allocation4], 0  ;;  %s1184_s0 = inlined_call_operand.hbm [shape: f32[8,128], index: 0, kind: input, shape index: {}]   ;;  %s1185_s1 = inlined_call_operand.hbm [shape: f32[128,128], index: 1, kind: input, shape index: {}]   ;;  %s1186_s2 = inlined_call_operand.vmem [shape: f32[1,128], index: 2, kind: input, shape index: {}]   ;;  %s1187_s3 = inlined_call_operand.hbm [shape: f32[128,128], index: 3, kind: input, shape index: {}]   ;;  %s1188_s4 = inlined_call_operand.vmem [shape: f32[1,128], index: 4, kind: input, shape index: {}]   ;;  %s1189_s5 = inlined_call_operand.hbm [shape: f32[128,128], index: 5, kind: input, shape index: {}]   ;;  %s1190_s6 = inlined_call_operand.vmem [shape: f32[1,128], index: 6, kind: input, shape index: {}]   ;;  %s1191_s7 = inlined_call_operand.hbm [shape: f32[128,128], index: 7, kind: input, shape index: {}]   ;;  %s1192_s8 = inlined_call_operand.vmem [shape: f32[1,128], index: 8, kind: input, shape index: {}]   ;;  %s1193_s9 = inlined_call_operand.hbm [shape: f32[8,128], index: 9, kind: output, shape index: {}]  }
   0x1   :  { %15 = vsyncpa [#allocation7], 0 }
   0x2   :  { %16 = vsyncpa [#allocation10], 0 }
   0x3   :  { %17 = vsyncpa [#allocation5], 0  ;;  %s986_s30 = smov [#allocation6]   ;;  %s846_s13 = scalar_lea.hbm %s1185_s1, 2048 }
   0x4   :  { %s33_s10 = sshll.u32 %s986_s30, 4  ;;  %p847_p0 = scmp.ne.s32.totalorder %s1185_s1, %s846_s13  ;;  %s34_s10 = int_to_ptr.vmem [resolvable:$true] %s33_s10 }
   0x5   :  { %p850_p1 = scmp.lt.u32.totalorder %s846_s13, %s1185_s1 }
   0x7   :  { %p852_p2 = pnand %p850_p1, %p847_p0 }
   0x9   :  { %855 = shalt.err (!%p852_p2)
}
   0xa   :  { %s856_s18 = scalar_lea.vmem %s34_s10, 2048  ;;  %p861_p4 = scmp.lt.s32.totalorder %s34_s10, %s34_s10 }
   0xb   :  { %p857_p3 = scmp.ne.s32.totalorder %s34_s10, %s856_s18  ;;  %p862_p5 = scmp.lt.s32.totalorder %s856_s18, %s856_s18 }
   0xd   :  { %p863_p6 = por %p862_p5, %p861_p4 }
   0xf   :  { %p864_p7 = pnand %p863_p6, %p857_p3 }
  0x11   :  { %867 = shalt.err (!%p864_p7)
}
  0x12   :  { %s987_s19 = smov 128   ;;  %s988_s20 = smov 8  }
  0x13   :  { %39 = dma.hbm_to_vmem [thread:$0]  %s1185_s1, 2048, %s34_s10, [#allocation7], %s987_s19, %s987_s19, %s988_s20  }
  0x14   :  { %s989_s23 = smov [#allocation9]   ;;  %s990_s25 = smov [#allocation3]  }
  0x15   :  { %s61_s24 = sshll.u32 %s989_s23, 4  ;;  %s24_s26 = sshll.u32 %s990_s25, 4  ;;  %s62_s24 = int_to_ptr.vmem [resolvable:$true] %s61_s24  ;;  %s25_s26 = int_to_ptr.vmem [resolvable:$true] %s24_s26 }
  0x16   :  { %s868_s29 = scalar_lea.hbm %s1189_s5, 2048 }
  0x17   :  { %p869_p8 = scmp.ne.s32.totalorder %s1189_s5, %s868_s29  ;;  %p872_p9 = scmp.lt.u32.totalorder %s868_s29, %s1189_s5 }
  0x19   :  { %p874_p10 = pnand %p872_p9, %p869_p8 }
  0x1b   :  { %877 = shalt.err (!%p874_p10)
}
  0x1c   :  { %s878_s1 = scalar_lea.vmem %s62_s24, 2048  ;;  %p883_p12 = scmp.lt.s32.totalorder %s62_s24, %s62_s24 }
  0x1d   :  { %p879_p11 = scmp.ne.s32.totalorder %s62_s24, %s878_s1  ;;  %p884_p13 = scmp.lt.s32.totalorder %s878_s1, %s878_s1 }
  0x1f   :  { %p885_p0 = por %p884_p13, %p883_p12 }
  0x21   :  { %p886_p1 = pnand %p885_p0, %p879_p11 }
  0x23   :  { %889 = shalt.err (!%p886_p1)
}
  0x24   :  { %67 = dma.hbm_to_vmem [thread:$0]  %s1189_s5, 2048, %s62_s24, [#allocation10], %s987_s19, %s987_s19, %s988_s20  }
  0x25   :  { %s890_s17 = scalar_lea.hbm %s1184_s0, 128 }
  0x26   :  { %p891_p2 = scmp.ne.s32.totalorder %s1184_s0, %s890_s17  ;;  %p894_p3 = scmp.lt.u32.totalorder %s890_s17, %s1184_s0 }
  0x28   :  { %p896_p4 = pnand %p894_p3, %p891_p2 }
  0x2a   :  { %899 = shalt.err (!%p896_p4)
}
  0x2b   :  { %s900_s25 = scalar_lea.vmem %s25_s26, 128  ;;  %p905_p6 = scmp.lt.s32.totalorder %s25_s26, %s25_s26 }
  0x2c   :  { %p901_p5 = scmp.ne.s32.totalorder %s25_s26, %s900_s25  ;;  %p906_p7 = scmp.lt.s32.totalorder %s900_s25, %s900_s25 }
  0x2e   :  { %p907_p8 = por %p906_p7, %p905_p6 }
  0x30   :  { %p908_p9 = pnand %p907_p8, %p901_p5 }
  0x32   :  { %911 = shalt.err (!%p908_p9)
}
  0x33   :  { %27 = dma.hbm_to_vmem [thread:$0]  %s1184_s0, 128, %s25_s26, [#allocation4]  }
  0x34   :  { %s991_s27 = smov [#allocation8]   ;;  %s992_s29 = smov [#allocation11]  }
  0x35   :  { %s47_s28 = sshll.u32 %s991_s27, 4  ;;  %s75_s30 = sshll.u32 %s992_s29, 4  ;;  %s48_s28 = int_to_ptr.vmem [resolvable:$true] %s47_s28  ;;  %s76_s30 = int_to_ptr.vmem [resolvable:$true] %s75_s30 }
  0x36   :  { %s912_s13 = scalar_lea.hbm %s1187_s3, 2048 }
  0x37   :  { %p913_p10 = scmp.ne.s32.totalorder %s1187_s3, %s912_s13  ;;  %p916_p11 = scmp.lt.u32.totalorder %s912_s13, %s1187_s3 }
  0x39   :  { %p918_p12 = pnand %p916_p11, %p913_p10 }
  0x3b   :  { %921 = shalt.err (!%p918_p12)
}
  0x3c   :  { %s922_s0 = scalar_lea.vmem %s48_s28, 2048  ;;  %p927_p0 = scmp.lt.s32.totalorder %s48_s28, %s48_s28 }
  0x3d   :  { %p923_p13 = scmp.ne.s32.totalorder %s48_s28, %s922_s0  ;;  %p928_p1 = scmp.lt.s32.totalorder %s922_s0, %s922_s0 }
  0x3f   :  { %p929_p2 = por %p928_p1, %p927_p0 }
  0x41   :  { %p930_p3 = pnand %p929_p2, %p923_p13 }
  0x43   :  { %933 = shalt.err (!%p930_p3)
}
  0x44   :  { %53 = dma.hbm_to_vmem [thread:$0]  %s1187_s3, 2048, %s48_s28, [#allocation7], %s987_s19, %s987_s19, %s988_s20  }
  0x45   :  { %s934_s21 = scalar_lea.hbm %s1191_s7, 2048 }
  0x46   :  { %p935_p4 = scmp.ne.s32.totalorder %s1191_s7, %s934_s21  ;;  %p938_p5 = scmp.lt.u32.totalorder %s934_s21, %s1191_s7 }
  0x48   :  { %p940_p6 = pnand %p938_p5, %p935_p4 }
  0x4a   :  { %943 = shalt.err (!%p940_p6)
}
  0x4b   :  { %s944_s24 = scalar_lea.vmem %s76_s30, 2048  ;;  %p949_p8 = scmp.lt.s32.totalorder %s76_s30, %s76_s30 }
  0x4c   :  { %p945_p7 = scmp.ne.s32.totalorder %s76_s30, %s944_s24  ;;  %p950_p9 = scmp.lt.s32.totalorder %s944_s24, %s944_s24 }
  0x4e   :  { %p951_p10 = por %p950_p9, %p949_p8 }
  0x50   :  { %p952_p11 = pnand %p951_p10, %p945_p7 }
  0x52   :  { %955 = shalt.err (!%p952_p11)
}
  0x53   :  { %81 = dma.hbm_to_vmem [thread:$0]  %s1191_s7, 2048, %s76_s30, [#allocation10], %s987_s19, %s987_s19, %s988_s20  }
  0x54   :  { %978 = dma.done.wait [#allocation4], 128  }
  0x55   :  { %979 = vsyncadd [#allocation4], 4294967168 }
  0x56   :  { %980 = dma.done.wait [#allocation7], 4096  }
  0x57   :  { %981 = vsyncadd [#allocation7], 4294963200 }
  0x58   :  { %982 = dma.done.wait [#allocation10], 4096  }
  0x59   :  { %983 = vsyncadd [#allocation10], 4294963200  ;;  %v993_v0 = vmov 0.0|0.0   ;;  %v994_v1 = vmov 0.0   ;;  %vm995_vm0 = vmmov 0   ;;  %v105_v2 = vld [vmem:[#allocation6] sm:$0xff] }
  0x5a   :  { %737 = vmatprep.subr.bf16.mxu0 %v993_v0  ;;  %103 = vst [vmem:[#allocation2] sm:$0x1] %v994_v1  ;;  %629 = vmatprep.mubr.msk.f32.mxu0 %vm995_vm0, %v994_v1  ;;  %v106_v3 = vld [vmem:[#allocation6 + $0x8] sm:$0xff]  ;;  %v107_v4 = vld [vmem:[#allocation6 + $0x10] sm:$0xff]  ;;  %v108_v6 = vld [vmem:[#allocation6 + $0x18] sm:$0xff] }
  0x5b   :  { %761 = vmatprep.subr.bf16.mxu1 %v993_v0  ;;  %664 = vmatprep.mubr.msk.f32.mxu1 %vm995_vm0, %v994_v1  ;;  %v738_v5 = vpack.c.bf16 %v106_v3, %v105_v2  ;;  %v741_v7 = vpack.c.bf16 %v108_v6, %v107_v4  ;;  %v109_v8 = vld [vmem:[#allocation6 + $0x20] sm:$0xff]  ;;  %v110_v9 = vld [vmem:[#allocation6 + $0x28] sm:$0xff]  ;;  %v201_v12 = vld [vmem:[#allocation8 + $0x10] sm:$0xff] }
  0x5c   :  { %v199_v10 = vld [vmem:[#allocation8] sm:$0xff]  ;;  %v200_v11 = vld [vmem:[#allocation8 + $0x8] sm:$0xff]  ;;  %v202_v13 = vld [vmem:[#allocation8 + $0x18] sm:$0xff]  ;;  %v744_v14 = vpack.c.bf16 %v110_v9, %v109_v8 }
  0x5d   :  { %739 = vmatpush3.bf16.msra.mxu0 %v738_v5  ;;  %v762_v15 = vpack.c.bf16 %v200_v11, %v199_v10  ;;  %v111_v16 = vld [vmem:[#allocation6 + $0x30] sm:$0xff]  ;;  %v112_v17 = vld [vmem:[#allocation6 + $0x38] sm:$0xff]  ;;  %v765_v18 = vpack.c.bf16 %v202_v13, %v201_v12  ;;  %v203_v19 = vld [vmem:[#allocation8 + $0x20] sm:$0xff] }
  0x5e   :  { %740 = vmatprep.subr.bf16.mxu0 %v993_v0  ;;  %v204_v20 = vld [vmem:[#allocation8 + $0x28] sm:$0xff]  ;;  %v747_v21 = vpack.c.bf16 %v112_v17, %v111_v16  ;;  %v113_v22 = vld [vmem:[#allocation6 + $0x40] sm:$0xff]  ;;  %v205_v25 = vld [vmem:[#allocation8 + $0x30] sm:$0xff] }
  0x5f   :  { %763 = vmatpush3.bf16.msra.mxu1 %v762_v15  ;;  %v114_v23 = vld [vmem:[#allocation6 + $0x48] sm:$0xff]  ;;  %v768_v24 = vpack.c.bf16 %v204_v20, %v203_v19  ;;  %v206_v26 = vld [vmem:[#allocation8 + $0x38] sm:$0xff]  ;;  %v115_v28 = vld [vmem:[#allocation6 + $0x50] sm:$0xff] }
  0x60   :  { %764 = vmatprep.subr.bf16.mxu1 %v993_v0  ;;  %v750_v27 = vpack.c.bf16 %v114_v23, %v113_v22  ;;  %v116_v29 = vld [vmem:[#allocation6 + $0x58] sm:$0xff]  ;;  %v771_v30 = vpack.c.bf16 %v206_v26, %v205_v25  ;;  %v207_v31 = vld [vmem:[#allocation8 + $0x40] sm:$0xff]  ;;  %v208_v32 = vld [vmem:[#allocation8 + $0x48] sm:$0xff] }
  0x61   :  { %742 = vmatpush3.bf16.msra.mxu0 %v741_v7  ;;  %v753_v33 = vpack.c.bf16 %v116_v29, %v115_v28  ;;  %v117_v34 = vld [vmem:[#allocation6 + $0x60] sm:$0xff]  ;;  %v118_v35 = vld [vmem:[#allocation6 + $0x68] sm:$0xff]  ;;  %v774_v36 = vpack.c.bf16 %v208_v32, %v207_v31  ;;  %v209_v37 = vld [vmem:[#allocation8 + $0x50] sm:$0xff] }
  0x62   :  { %743 = vmatprep.subr.bf16.mxu0 %v993_v0  ;;  %v210_v38 = vld [vmem:[#allocation8 + $0x58] sm:$0xff]  ;;  %v756_v39 = vpack.c.bf16 %v118_v35, %v117_v34  ;;  %v119_v40 = vld [vmem:[#allocation6 + $0x70] sm:$0xff]  ;;  %v211_v43 = vld [vmem:[#allocation8 + $0x60] sm:$0xff] }
  0x63   :  { %766 = vmatpush3.bf16.msra.mxu1 %v765_v18  ;;  %v120_v41 = vld [vmem:[#allocation6 + $0x78] sm:$0xff]  ;;  %v777_v42 = vpack.c.bf16 %v210_v38, %v209_v37  ;;  %v212_v44 = vld [vmem:[#allocation8 + $0x68] sm:$0xff]  ;;  %v213_v48 = vld [vmem:[#allocation8 + $0x70] sm:$0xff] }
  0x64   :  { %767 = vmatprep.subr.bf16.mxu1 %v993_v0  ;;  %v759_v45 = vpack.c.bf16 %v120_v41, %v119_v40  ;;  %v780_v46 = vpack.c.bf16 %v212_v44, %v211_v43  ;;  %v104_v47 = vld [vmem:[#allocation3] sm:$0xff]  ;;  %v293_v51 = vld [vmem:[#allocation9] sm:$0xff]  ;;  %v294_v52 = vld [vmem:[#allocation9 + $0x8] sm:$0xff] }
  0x65   :  { %745 = vmatpush3.bf16.msra.mxu0 %v744_v14  ;;  %v214_v49 = vld [vmem:[#allocation8 + $0x78] sm:$0xff]  ;;  %v295_v53 = vld [vmem:[#allocation9 + $0x10] sm:$0xff]  ;;  %v786_v54 = vpack.c.bf16 %v294_v52, %v293_v51  ;;  %v297_v57 = vld [vmem:[#allocation9 + $0x20] sm:$0xff] }
  0x66   :  { %746 = vmatprep.subr.bf16.mxu0 %v993_v0  ;;  %v783_v50 = vpack.c.bf16 %v214_v49, %v213_v48  ;;  %v296_v55 = vld [vmem:[#allocation9 + $0x18] sm:$0xff]  ;;  %v298_v58 = vld [vmem:[#allocation9 + $0x28] sm:$0xff]  ;;  %v299_v60 = vld [vmem:[#allocation9 + $0x30] sm:$0xff] }
  0x67   :  { %769 = vmatpush3.bf16.msra.mxu1 %v768_v24  ;;  %v789_v56 = vpack.c.bf16 %v296_v55, %v295_v53  ;;  %v792_v59 = vpack.c.bf16 %v298_v58, %v297_v57  ;;  %v300_v61 = vld [vmem:[#allocation9 + $0x38] sm:$0xff]  ;;  %v301_v63 = vld [vmem:[#allocation9 + $0x40] sm:$0xff]  ;;  %v302_v2 = vld [vmem:[#allocation9 + $0x48] sm:$0xff] }
  0x68   :  { %770 = vmatprep.subr.bf16.mxu1 %v993_v0  ;;  %v795_v62 = vpack.c.bf16 %v300_v61, %v299_v60  ;;  %v798_v3 = vpack.c.bf16 %v302_v2, %v301_v63  ;;  %v303_v4 = vld [vmem:[#allocation9 + $0x50] sm:$0xff]  ;;  %v304_v5 = vld [vmem:[#allocation9 + $0x58] sm:$0xff]  ;;  %v305_v7 = vld [vmem:[#allocation9 + $0x60] sm:$0xff] }
  0x69   :  { %748 = vmatpush3.bf16.msra.mxu0 %v747_v21  ;;  %v801_v6 = vpack.c.bf16 %v304_v5, %v303_v4  ;;  %v306_v8 = vld [vmem:[#allocation9 + $0x68] sm:$0xff]  ;;  %v525_v10 = vld [vmem:[%s1186_s2] ss:$0 sm:$0xff]  ;;  %v308_v16 = vld [vmem:[#allocation9 + $0x78] sm:$0xff] }
  0x6a   :  { %749 = vmatprep.subr.bf16.mxu0 %v993_v0  ;;  %v804_v9 = vpack.c.bf16 %v306_v8, %v305_v7  ;;  %v307_v15 = vld [vmem:[#allocation9 + $0x70] sm:$0xff]  ;;  %v387_v18 = vld [vmem:[#allocation11] sm:$0xff]  ;;  %v388_v19 = vld [vmem:[#allocation11 + $0x8] sm:$0xff] }
  0x6b   :  { %772 = vmatpush3.bf16.msra.mxu1 %v771_v30  ;;  %v807_v17 = vpack.c.bf16 %v308_v16, %v307_v15  ;;  %v389_v20 = vld [vmem:[#allocation11 + $0x10] sm:$0xff]  ;;  %v810_v21 = vpack.c.bf16 %v388_v19, %v387_v18  ;;  %v390_v22 = vld [vmem:[#allocation11 + $0x18] sm:$0xff]  ;;  %v391_v24 = vld [vmem:[#allocation11 + $0x20] sm:$0xff] }
  0x6c   :  { %773 = vmatprep.subr.bf16.mxu1 %v993_v0  ;;  %v813_v23 = vpack.c.bf16 %v390_v22, %v389_v20  ;;  %v392_v25 = vld [vmem:[#allocation11 + $0x28] sm:$0xff]  ;;  %v395_v29 = vld [vmem:[#allocation11 + $0x40] sm:$0xff]  ;;  %v397_v32 = vld [vmem:[#allocation11 + $0x50] sm:$0xff] }
  0x6d   :  { %751 = vmatpush3.bf16.msra.mxu0 %v750_v27  ;;  %v816_v26 = vpack.c.bf16 %v392_v25, %v391_v24  ;;  %v394_v27 = vld [vmem:[#allocation11 + $0x38] sm:$0xff]  ;;  %v396_v30 = vld [vmem:[#allocation11 + $0x48] sm:$0xff]  ;;  %v399_v35 = vld [vmem:[#allocation11 + $0x60] sm:$0xff] }
  0x6e   :  { %752 = vmatprep.subr.bf16.mxu0 %v993_v0  ;;  %v822_v31 = vpack.c.bf16 %v396_v30, %v395_v29  ;;  %v526_v38 = vld [vmem:[%s1188_s4] ss:$0 sm:$0xff]  ;;  %v402_v44 = vld [vmem:[#allocation11 + $0x78] sm:$0xff] }
  0x6f   :  { %775 = vmatpush3.bf16.msra.mxu1 %v774_v36  ;;  %v400_v36 = vld [vmem:[#allocation11 + $0x68] sm:$0xff]  ;;  %v401_v43 = vld [vmem:[#allocation11 + $0x70] sm:$0xff] }
  0x70   :  { %776 = vmatprep.subr.bf16.mxu1 %v993_v0  ;;  %v828_v37 = vpack.c.bf16 %v400_v36, %v399_v35  ;;  %v483_v60 = vld [vmem:[#allocation2] sm:$0x1] }
  0x71   :  { %754 = vmatpush3.bf16.msra.mxu0 %v753_v33  ;;  %v398_v33 = vld [vmem:[#allocation11 + $0x58] sm:$0xff] }
  0x72   :  { %755 = vmatprep.subr.bf16.mxu0 %v993_v0  ;;  %v825_v34 = vpack.c.bf16 %v398_v33, %v397_v32 }
  0x73   :  { %778 = vmatpush3.bf16.msra.mxu1 %v777_v42 }
  0x74   :  { %779 = vmatprep.subr.bf16.mxu1 %v993_v0 }
  0x75   :  { %757 = vmatpush3.bf16.msra.mxu0 %v756_v39 }
  0x76   :  { %758 = vmatprep.subr.bf16.mxu0 %v993_v0 }
  0x77   :  { %781 = vmatpush3.bf16.msra.mxu1 %v780_v46  ;;  %v527_v46 = vld [vmem:[%s1190_s6] ss:$0 sm:$0xff]  ;;  %s996_s6 = smov [#allocation12]  }
  0x78   :  { %782 = vmatprep.subr.bf16.mxu1 %v993_v0 }
  0x79   :  { %760 = vmatpush3.bf16.msra.mxu0 %v759_v45  ;;  %v831_v45 = vpack.c.bf16 %v402_v44, %v401_v43 }
  0x7a   :  { %785 = vmatprep.subr.bf16.mxu0 %v993_v0 }
  0x7b   :  { %784 = vmatpush3.bf16.msra.mxu1 %v783_v50  ;;  %v528_v50 = vld [vmem:[%s1192_s8] ss:$0 sm:$0xff]  ;;  %s514_s8 = sshll.u32 %s996_s6, 4  ;;  %s515_s8 = int_to_ptr.vmem [resolvable:$true] %s514_s8 }
  0x7c   :  { %630 = vmatmul.mubr.f32.vlgmr.msra.gmra.mrb[0].mxu0 %v104_v47  ;;  %809 = vmatprep.subr.bf16.mxu1 %v993_v0  ;;  %s956_s11 = scalar_lea.vmem %s515_s8, 128  ;;  %p961_p13 = scmp.lt.s32.totalorder %s515_s8, %s515_s8 }
  0x7d   :  { %699 = vmatprep.mubr.msk.f32.mxu0 %vm995_vm0, %v994_v1  ;;  %787 = vmatpush3.bf16.msra.mxu0 %v786_v54  ;;  %p957_p12 = scmp.ne.s32.totalorder %s515_s8, %s956_s11  ;;  %p962_p0 = scmp.lt.s32.totalorder %s956_s11, %s956_s11 }
  0x7e   :  { %788 = vmatprep.subr.bf16.mxu0 %v993_v0 }
  0x7f   :  { %p963_p1 = por %p962_p0, %p961_p13 }
  0x81   :  { %790 = vmatpush3.bf16.msra.mxu0 %v789_v56  ;;  %p964_p2 = pnand %p963_p1, %p957_p12 }
  0x82   :  { %791 = vmatprep.subr.bf16.mxu0 %v993_v0 }
  0x85   :  { %793 = vmatpush3.bf16.msra.mxu0 %v792_v59 }
  0x86   :  { %794 = vmatprep.subr.bf16.mxu0 %v993_v0 }
  0x89   :  { %796 = vmatpush3.bf16.msra.mxu0 %v795_v62 }
  0x8a   :  { %797 = vmatprep.subr.bf16.mxu0 %v993_v0 }
  0x8d   :  { %799 = vmatpush3.bf16.msra.mxu0 %v798_v3  ;;  %v501_v3 = vlaneseq }
  0x8e   :  { %800 = vmatprep.subr.bf16.mxu0 %v993_v0 }
  0x8f   :  { %v502_v4 = vshrl.u32 %v501_v3, 7 }
  0x91   :  { %802 = vmatpush3.bf16.msra.mxu0 %v801_v6  ;;  %v503_v5 = vsub.s32 0, %v502_v4 }
  0x92   :  { %803 = vmatprep.subr.bf16.mxu0 %v993_v0 }
  0x95   :  { %805 = vmatpush3.bf16.msra.mxu0 %v804_v9 }
  0x96   :  { %806 = vmatprep.subr.bf16.mxu0 %v993_v0 }
  0x99   :  { %808 = vmatpush3.bf16.msra.mxu0 %v807_v17 }
 0x14f   :  { %v194_v11 = vpop.f32.mrb[0].mxu0 }
 0x150   :  { %v195_v12 = vadd.f32 %v525_v10, %v194_v11  ;;  %v631_v13 = vpop.f32.mrb[1].mxu0 }
 0x152   :  { %v198_v14 = vmax.f32 %v195_v12, 0.0 }
 0x154   :  { %665 = vmatmul.mubr.f32.vlgmr.msra.gmra.mrb[0].mxu1 %v198_v14 }
 0x155   :  { %734 = vmatprep.mubr.msk.f32.mxu1 %vm995_vm0, %v994_v1  ;;  %811 = vmatpush3.bf16.msra.mxu1 %v810_v21  ;;  %v393_v1 = vld [vmem:[#allocation11 + $0x30] sm:$0xff] }
 0x156   :  { %812 = vmatprep.subr.bf16.mxu1 %v993_v0  ;;  %v819_v28 = vpack.c.bf16 %v394_v27, %v393_v1 }
 0x159   :  { %814 = vmatpush3.bf16.msra.mxu1 %v813_v23 }
 0x15a   :  { %815 = vmatprep.subr.bf16.mxu1 %v993_v0 }
 0x15d   :  { %817 = vmatpush3.bf16.msra.mxu1 %v816_v26 }
 0x15e   :  { %818 = vmatprep.subr.bf16.mxu1 %v993_v0 }
 0x161   :  { %820 = vmatpush3.bf16.msra.mxu1 %v819_v28 }
 0x162   :  { %821 = vmatprep.subr.bf16.mxu1 %v993_v0 }
 0x165   :  { %823 = vmatpush3.bf16.msra.mxu1 %v822_v31 }
 0x166   :  { %824 = vmatprep.subr.bf16.mxu1 %v993_v0 }
 0x169   :  { %826 = vmatpush3.bf16.msra.mxu1 %v825_v34 }
 0x16a   :  { %827 = vmatprep.subr.bf16.mxu1 %v993_v0 }
 0x16d   :  { %829 = vmatpush3.bf16.msra.mxu1 %v828_v37 }
 0x16e   :  { %830 = vmatprep.subr.bf16.mxu1 %v993_v0 }
 0x171   :  { %832 = vmatpush3.bf16.msra.mxu1 %v831_v45 }
 0x227   :  { %v288_v39 = vpop.f32.mrb[0].mxu1 }
 0x228   :  { %v289_v40 = vadd.f32 %v526_v38, %v288_v39  ;;  %v666_v41 = vpop.f32.mrb[1].mxu1 }
 0x22a   :  { %v292_v42 = vmax.f32 %v289_v40, 0.0 }
 0x22c   :  { %700 = vmatmul.mubr.f32.vlgmr.msra.gmra.mrb[2].mxu0 %v292_v42 }
 0x2ff   :  { %v382_v47 = vpop.f32.mrb[2].mxu0 }
 0x300   :  { %v383_v48 = vadd.f32 %v527_v46, %v382_v47  ;;  %v701_v0 = vpop.f32.mrb[3].mxu0 }
 0x302   :  { %v386_v49 = vmax.f32 %v383_v48, 0.0 }
 0x304   :  { %735 = vmatmul.mubr.f32.vlgmr.msra.gmra.mrb[2].mxu1 %v386_v49 }
 0x3d7   :  { %v476_v51 = vpop.f32.mrb[2].mxu1 }
 0x3d8   :  { %v477_v52 = vadd.f32 %v528_v50, %v476_v51  ;;  %v736_v53 = vpop.f32.mrb[3].mxu1 }
 0x3da   :  { %v484_v54 = vmul.f32 %v477_v52, %v477_v52 }
 0x3dc   :  { %v485_v55 = vrot.slane %v484_v54, 4 }
 0x3de   :  { %v486_v56 = vadd.f32 %v485_v55, %v484_v54 }
 0x3e0   :  { %v487_v57 = vrot.slane %v486_v56, 2 }
 0x3e2   :  { %v488_v58 = vadd.f32 %v487_v57, %v486_v56 }
 0x3e4   :  { %v489_v59 = vrot.slane %v488_v58, 1 }
 0x3e6   :  { %v490_v61 = vadd.f32 %v489_v59, %v488_v58 }
 0x3e8   :  { %v491_v62 = vadd.f32 %v490_v61, %v483_v60 }
 0x3ea   :  { %492 = vst [vmem:[#allocation2] sm:$0x1] %v491_v62 }
 0x3f1   :  { %v496_v63 = vld [vmem:[#allocation2] sm:$0x1] }
 0x3f2   :  { %v497_v2 = vmax.f32 %v496_v63, 1e-24 }
 0x3f4   :  { %844 = vrsqrt.f32 %v497_v2 }
 0x3fe   :  { %v845_v6 = vpop.eup %844 }
 0x3ff   :  { %v504_v7 = vrot.slane %v845_v6, %v503_v5 }
 0x401   :  { %v506_v8 = vmul.f32 %v504_v7, %v477_v52 }
 0x403   :  { %507 = vst [vmem:[#allocation12] sm:$0xff] %v506_v8 }
 0x404   :  { %967 = shalt.err (!%p964_p2)
}
 0x405   :  { %s968_s1 = scalar_lea.hbm %s1193_s9, 128 }
 0x406   :  { %p969_p3 = scmp.ne.s32.totalorder %s1193_s9, %s968_s1  ;;  %p972_p4 = scmp.lt.u32.totalorder %s968_s1, %s1193_s9 }
 0x408   :  { %p974_p5 = pnand %p972_p4, %p969_p3 }
 0x40a   :  { %977 = shalt.err (!%p974_p5)
}
 0x40b   :  { %517 = dma.vmem_to_hbm [thread:$0]  %s515_s8, 128, %s1193_s9, [#allocation5]  }
 0x40c   :  { %984 = dma.done.wait [#allocation5], 128  }
 0x40d   :  { %985 = vsyncadd [#allocation5], 4294967168 }
 0x40e   :  { %521 = vsyncpa [#allocation4], 1 }
 0x40f   :  { %522 = vsyncpa [#allocation7], 1 }
 0x410   :  { %523 = vsyncpa [#allocation10], 1 }
 0x411   :  { %524 = vsyncpa [#allocation5], 1 }

</bundles_post_ra>
